<compile_context>
chip_gen: v7x
topology: tpu7x:2x2x1
jax: 0.10.0
libtpu: 0.0.40
codegen_flags: <defaults>
</compile_context>

<pallas_src>
import jax
import jax.numpy as jnp
from jax.experimental import pallas as pl
from jax.experimental.pallas import tpu as pltpu


def _compress_conv_kernel(x_ref, wv_ref, b_ref, o_ref, s_ref):
    """One batch-block per grid step.

    x_ref : (Bt, C, H, W)       unpadded NCHW input block (VMEM)
    wv_ref: (9, Bt*C*Lp)        per-tap weight lane-vectors (VMEM)
    b_ref : (1,)                bias (SMEM)
    o_ref : (Bt, 1, H, W)       output block (VMEM)
    s_ref : (H+2, Bt*C*Lp)      zero-padded, lane-folded plane stack (VMEM f32)
    """
    Bt, C, H, W = x_ref.shape
    Ww = s_ref.shape[1]
    Lp = Ww // (Bt * C)                       # lane stride per (batch, channel) plane

    # Hoisted scalar / weight reads — once per kernel invocation, outside all loops.
    bias = b_ref[0]
    wv = [wv_ref[t:t + 1, :] for t in range(9)]          # 9 x (1, Ww), tap t = dy*3+dx

    # ---- 1. Build the zero-padded, lane-folded plane stack in VMEM ----------
    # (replaces the wrapper jnp.pad: no extra HBM round trip; halo is zero).
    s_ref[...] = jnp.zeros_like(s_ref)
    for b in range(Bt):
        for c in range(C):
            lo = (b * C + c) * Lp + 1                    # interior cols of plane (b, c)
            s_ref[1:H + 1, lo:lo + W] = x_ref[b, c, :, :].astype(jnp.float32)

    S = s_ref[...]                                       # (H+2, Ww)
    rows = [S[dy:dy + H, :] for dy in range(3)]          # 3 sublane-shifted views

    # ---- 2. Factored 3x3 taps over the folded lane axis ---------------------
    # s_dx(h, lane) = sum_dy w[c, dy, dx] * padded_plane_c(h+dy, lane)  at full
    # folded width (weights arrive as lane-vectors), then ONE lane shift per dx.
    acc = jnp.zeros((H, Ww - 2), jnp.float32)
    for dx in range(3):
        s_dx = (rows[0] * wv[dx]
                + rows[1] * wv[3 + dx]
                + rows[2] * wv[6 + dx])                  # (H, Ww)
        acc = acc + s_dx[:, dx:dx + Ww - 2]              # lane shift by dx

    # ---- 3. Un-fold: reduce over channels, add bias, store ------------------
    for b in range(Bt):
        base = b * C * Lp
        out_b = acc[:, base:base + W]
        for c in range(1, C):
            lo = base + c * Lp
            out_b = out_b + acc[:, lo:lo + W]
        o_ref[b, 0, :, :] = (out_b + bias).astype(o_ref.dtype)


def _tpu_kind() -> str:
    try:
        return jax.devices()[0].device_kind.lower()
    except Exception:
        return ""


def _round_up(x: int, m: int) -> int:
    return (x + m - 1) // m * m


def compress_conv(x_nchw: jax.Array, weight: jax.Array, bias: jax.Array,
                  *, block_b: int | None = None,
                  vmem_limit_bytes: int | None = None) -> jax.Array:
    """Equivalent of CompressConv.forward.

    x_nchw : (B, C, H, W) float32
    weight : (1, C, 3, 3) float32   (PyTorch Conv2d weight layout)
    bias   : (1,)          float32
    returns: (B, 1, H, W) float32
    """
    B, C, H, W = x_nchw.shape
    assert weight.shape == (1, C, 3, 3), weight.shape

    kind = _tpu_kind()
    two_tensorcores = ("v7" in kind) or ("7x" in kind)

    if block_b is None:
        if two_tensorcores and B >= 2:
            block_b = max(1, B // 2)      # keep >=2 "parallel" steps: feed both TCs
        else:
            block_b = B                   # single TC: one grid step, one DMA
    block_b = max(1, min(block_b, B))
    while B % block_b != 0:               # TODO(synk): ragged batch via cdiv + masking
        block_b -= 1

    if vmem_limit_bytes is None:
        # v7x has 64 MiB VMEM -> stay <= ~32 MiB; v5e/v6e have 128 MiB -> 64 MiB.
        vmem_limit_bytes = (32 if two_tensorcores else 64) * 1024 * 1024

    # Per-plane lane stride: >= W+2 and chosen so no plane straddles a 128-lane
    # vreg boundary (padding to the same vreg footprint costs no extra VPU work).
    if W + 2 <= 128:
        Lp = pl.next_power_of_2(W + 2)
    else:
        Lp = _round_up(W + 2, 128)
    Ww = block_b * C * Lp

    # Fold the per-channel 3x3 weights into 9 lane-vectors matching the folded
    # plane layout: lane (b*C + c)*Lp + j holds weight[0, c, dy, dx] for tap
    # t = dy*3 + dx.  (36 floats of wrapper work; negligible.)
    w_t = weight.reshape(C, 9).T.astype(jnp.float32)             # (9, C)
    wv = jnp.tile(jnp.repeat(w_t, Lp, axis=1), (1, block_b))     # (9, Ww)
    b_vec = bias.reshape(-1).astype(jnp.float32)                 # (1,)

    grid = (B // block_b,)

    out = pl.pallas_call(
        _compress_conv_kernel,
        out_shape=jax.ShapeDtypeStruct((B, 1, H, W), x_nchw.dtype),
        grid_spec=pltpu.PrefetchScalarGridSpec(
            num_scalar_prefetch=0,
            grid=grid,
            in_specs=[
                pl.BlockSpec((block_b, C, H, W), lambda i: (i, 0, 0, 0)),   # x (unpadded)
                pl.BlockSpec((9, Ww), lambda i: (0, 0)),                    # weight lane-vectors
                pl.BlockSpec(memory_space=pltpu.MemorySpace.SMEM),          # bias scalar
            ],
            out_specs=pl.BlockSpec((block_b, 1, H, W), lambda i: (i, 0, 0, 0)),
            scratch_shapes=[pltpu.VMEM((H + 2, Ww), jnp.float32)],          # padded plane stack
        ),
        compiler_params=pltpu.CompilerParams(
            dimension_semantics=("parallel",),
            vmem_limit_bytes=vmem_limit_bytes,
        ),
    )(x_nchw, wv, b_vec)

    return out                                                    # (B, 1, H, W)


def _reference_conv(x_nchw, weight, bias):
    """Pure-JAX reference (lax conv) for correctness check."""
    return jax.lax.conv_general_dilated(
        x_nchw, weight,
        window_strides=(1, 1),
        padding=((1, 1), (1, 1)),
        dimension_numbers=("NCHW", "OIHW", "NCHW"),
    ) + bias.reshape(1, -1, 1, 1)


if __name__ == "__main__":
    key = jax.random.PRNGKey(0)
    kx, kw, kb = jax.random.split(key, 3)

    B, C, H, W = 2, 4, 16, 16          # n_feature = C = 4
    x = jax.random.normal(kx, (B, C, H, W), dtype=jnp.float32)

    # Deterministic synthetic parameters (shapes from nn.Conv2d(C, 1, 3, padding=1)).
    weight = jax.random.normal(kw, (1, C, 3, 3), dtype=jnp.float32) * 0.1
    bias = jax.random.normal(kb, (1,), dtype=jnp.float32) * 0.1

    out = compress_conv(x, weight, bias)
    out = jax.block_until_ready(out)

    ref = _reference_conv(x, weight, bias)
    assert out.shape == (B, 1, H, W), out.shape
    err = float(jnp.max(jnp.abs(out - ref)))
    assert jnp.allclose(out, ref, atol=1e-4, rtol=1e-4), err

    print("KERNEL_OK")
</pallas_src>

<mosaic_0001>
module attributes {stable_mosaic.version = 11 : i64} {
  func.func @_compress_conv_kernel(%arg0: i32, %arg1: memref<2x4x16x16xf32, #tpu.memory_space<vmem>>, %arg2: memref<9x256xf32, #tpu.memory_space<vmem>>, %arg3: memref<1xf32, #tpu.memory_space<smem>>, %arg4: memref<2x1x16x16xf32, #tpu.memory_space<vmem>>, %arg5: memref<18x256xf32, #tpu.memory_space<vmem>>) attributes {dimension_semantics = [#tpu.dimension_semantics<parallel>], iteration_bounds = array<i64: 1>, scalar_prefetch = 0 : i64, scratch_operands = 1 : i64, tpu.core_type = #tpu.core_type<tc>, window_params = [{transform_indices = @transform_0, window_bounds = array<i64: 2, 4, 16, 16>}, {pipeline_mode = #tpu.pipeline_mode<synchronous>, transform_indices = @transform_1, window_bounds = array<i64: 9, 256>}, {transform_indices = @transform_2, window_bounds = array<i64: 1>}, {transform_indices = @transform_3, window_bounds = array<i64: 2, 1, 16, 16>}]} {
    %c0 = arith.constant 0 : index
    %0 = memref.load %arg3[%c0] : memref<1xf32, #tpu.memory_space<smem>>
    %c0_0 = arith.constant 0 : index
    %c0_1 = arith.constant 0 : index
    %1 = vector.load %arg2[%c0_0, %c0_1] : memref<9x256xf32, #tpu.memory_space<vmem>>, vector<1x256xf32>
    %c1 = arith.constant 1 : index
    %c0_2 = arith.constant 0 : index
    %2 = vector.load %arg2[%c1, %c0_2] : memref<9x256xf32, #tpu.memory_space<vmem>>, vector<1x256xf32>
    %c2 = arith.constant 2 : index
    %c0_3 = arith.constant 0 : index
    %3 = vector.load %arg2[%c2, %c0_3] : memref<9x256xf32, #tpu.memory_space<vmem>>, vector<1x256xf32>
    %c3 = arith.constant 3 : index
    %c0_4 = arith.constant 0 : index
    %4 = vector.load %arg2[%c3, %c0_4] : memref<9x256xf32, #tpu.memory_space<vmem>>, vector<1x256xf32>
    %c4 = arith.constant 4 : index
    %c0_5 = arith.constant 0 : index
    %5 = vector.load %arg2[%c4, %c0_5] : memref<9x256xf32, #tpu.memory_space<vmem>>, vector<1x256xf32>
    %c5 = arith.constant 5 : index
    %c0_6 = arith.constant 0 : index
    %6 = vector.load %arg2[%c5, %c0_6] : memref<9x256xf32, #tpu.memory_space<vmem>>, vector<1x256xf32>
    %c6 = arith.constant 6 : index
    %c0_7 = arith.constant 0 : index
    %7 = vector.load %arg2[%c6, %c0_7] : memref<9x256xf32, #tpu.memory_space<vmem>>, vector<1x256xf32>
    %c7 = arith.constant 7 : index
    %c0_8 = arith.constant 0 : index
    %8 = vector.load %arg2[%c7, %c0_8] : memref<9x256xf32, #tpu.memory_space<vmem>>, vector<1x256xf32>
    %c8 = arith.constant 8 : index
    %c0_9 = arith.constant 0 : index
    %9 = vector.load %arg2[%c8, %c0_9] : memref<9x256xf32, #tpu.memory_space<vmem>>, vector<1x256xf32>
    %cst = arith.constant 0.000000e+00 : f32
    %10 = vector.broadcast %cst : f32 to vector<18x256xf32>
    %c0_10 = arith.constant 0 : index
    %c0_11 = arith.constant 0 : index
    %11 = vector.load %arg5[%c0_10, %c0_11] : memref<18x256xf32, #tpu.memory_space<vmem>>, vector<18x256xf32>
    tpu.vector_store %arg5[%c0_10, %c0_11], %10 {strides = array<i32>} : memref<18x256xf32, #tpu.memory_space<vmem>>, vector<18x256xf32>,
    %c0_12 = arith.constant 0 : index
    %c0_13 = arith.constant 0 : index
    %c0_14 = arith.constant 0 : index
    %c0_15 = arith.constant 0 : index
    %12 = vector.load %arg1[%c0_12, %c0_13, %c0_14, %c0_15] : memref<2x4x16x16xf32, #tpu.memory_space<vmem>>, vector<1x1x16x16xf32>
    %13 = vector.shape_cast %12 : vector<1x1x16x16xf32> to vector<16x16xf32>
    %c1_16 = arith.constant 1 : index
    %c1_17 = arith.constant 1 : index
    %14 = vector.load %arg5[%c1_16, %c1_17] : memref<18x256xf32, #tpu.memory_space<vmem>>, vector<16x16xf32>
    tpu.vector_store %arg5[%c1_16, %c1_17], %13 {strides = array<i32>} : memref<18x256xf32, #tpu.memory_space<vmem>>, vector<16x16xf32>,
    %c0_18 = arith.constant 0 : index
    %c1_19 = arith.constant 1 : index
    %c0_20 = arith.constant 0 : index
    %c0_21 = arith.constant 0 : index
    %15 = vector.load %arg1[%c0_18, %c1_19, %c0_20, %c0_21] : memref<2x4x16x16xf32, #tpu.memory_space<vmem>>, vector<1x1x16x16xf32>
    %16 = vector.shape_cast %15 : vector<1x1x16x16xf32> to vector<16x16xf32>
    %c1_22 = arith.constant 1 : index
    %c33 = arith.constant 33 : index
    %17 = vector.load %arg5[%c1_22, %c33] : memref<18x256xf32, #tpu.memory_space<vmem>>, vector<16x16xf32>
    tpu.vector_store %arg5[%c1_22, %c33], %16 {strides = array<i32>} : memref<18x256xf32, #tpu.memory_space<vmem>>, vector<16x16xf32>,
    %c0_23 = arith.constant 0 : index
    %c2_24 = arith.constant 2 : index
    %c0_25 = arith.constant 0 : index
    %c0_26 = arith.constant 0 : index
    %18 = vector.load %arg1[%c0_23, %c2_24, %c0_25, %c0_26] : memref<2x4x16x16xf32, #tpu.memory_space<vmem>>, vector<1x1x16x16xf32>
    %19 = vector.shape_cast %18 : vector<1x1x16x16xf32> to vector<16x16xf32>
    %c1_27 = arith.constant 1 : index
    %c65 = arith.constant 65 : index
    %20 = vector.load %arg5[%c1_27, %c65] : memref<18x256xf32, #tpu.memory_space<vmem>>, vector<16x16xf32>
    tpu.vector_store %arg5[%c1_27, %c65], %19 {strides = array<i32>} : memref<18x256xf32, #tpu.memory_space<vmem>>, vector<16x16xf32>,
    %c0_28 = arith.constant 0 : index
    %c3_29 = arith.constant 3 : index
    %c0_30 = arith.constant 0 : index
    %c0_31 = arith.constant 0 : index
    %21 = vector.load %arg1[%c0_28, %c3_29, %c0_30, %c0_31] : memref<2x4x16x16xf32, #tpu.memory_space<vmem>>, vector<1x1x16x16xf32>
    %22 = vector.shape_cast %21 : vector<1x1x16x16xf32> to vector<16x16xf32>
    %c1_32 = arith.constant 1 : index
    %c97 = arith.constant 97 : index
    %23 = vector.load %arg5[%c1_32, %c97] : memref<18x256xf32, #tpu.memory_space<vmem>>, vector<16x16xf32>
    tpu.vector_store %arg5[%c1_32, %c97], %22 {strides = array<i32>} : memref<18x256xf32, #tpu.memory_space<vmem>>, vector<16x16xf32>,
    %c1_33 = arith.constant 1 : index
    %c0_34 = arith.constant 0 : index
    %c0_35 = arith.constant 0 : index
    %c0_36 = arith.constant 0 : index
    %24 = vector.load %arg1[%c1_33, %c0_34, %c0_35, %c0_36] : memref<2x4x16x16xf32, #tpu.memory_space<vmem>>, vector<1x1x16x16xf32>
    %25 = vector.shape_cast %24 : vector<1x1x16x16xf32> to vector<16x16xf32>
    %c1_37 = arith.constant 1 : index
    %c129 = arith.constant 129 : index
    %26 = vector.load %arg5[%c1_37, %c129] : memref<18x256xf32, #tpu.memory_space<vmem>>, vector<16x16xf32>
    tpu.vector_store %arg5[%c1_37, %c129], %25 {strides = array<i32>} : memref<18x256xf32, #tpu.memory_space<vmem>>, vector<16x16xf32>,
    %c1_38 = arith.constant 1 : index
    %c1_39 = arith.constant 1 : index
    %c0_40 = arith.constant 0 : index
    %c0_41 = arith.constant 0 : index
    %27 = vector.load %arg1[%c1_38, %c1_39, %c0_40, %c0_41] : memref<2x4x16x16xf32, #tpu.memory_space<vmem>>, vector<1x1x16x16xf32>
    %28 = vector.shape_cast %27 : vector<1x1x16x16xf32> to vector<16x16xf32>
    %c1_42 = arith.constant 1 : index
    %c161 = arith.constant 161 : index
    %29 = vector.load %arg5[%c1_42, %c161] : memref<18x256xf32, #tpu.memory_space<vmem>>, vector<16x16xf32>
    tpu.vector_store %arg5[%c1_42, %c161], %28 {strides = array<i32>} : memref<18x256xf32, #tpu.memory_space<vmem>>, vector<16x16xf32>,
    %c1_43 = arith.constant 1 : index
    %c2_44 = arith.constant 2 : index
    %c0_45 = arith.constant 0 : index
    %c0_46 = arith.constant 0 : index
    %30 = vector.load %arg1[%c1_43, %c2_44, %c0_45, %c0_46] : memref<2x4x16x16xf32, #tpu.memory_space<vmem>>, vector<1x1x16x16xf32>
    %31 = vector.shape_cast %30 : vector<1x1x16x16xf32> to vector<16x16xf32>
    %c1_47 = arith.constant 1 : index
    %c193 = arith.constant 193 : index
    %32 = vector.load %arg5[%c1_47, %c193] : memref<18x256xf32, #tpu.memory_space<vmem>>, vector<16x16xf32>
    tpu.vector_store %arg5[%c1_47, %c193], %31 {strides = array<i32>} : memref<18x256xf32, #tpu.memory_space<vmem>>, vector<16x16xf32>,
    %c1_48 = arith.constant 1 : index
    %c3_49 = arith.constant 3 : index
    %c0_50 = arith.constant 0 : index
    %c0_51 = arith.constant 0 : index
    %33 = vector.load %arg1[%c1_48, %c3_49, %c0_50, %c0_51] : memref<2x4x16x16xf32, #tpu.memory_space<vmem>>, vector<1x1x16x16xf32>
    %34 = vector.shape_cast %33 : vector<1x1x16x16xf32> to vector<16x16xf32>
    %c1_52 = arith.constant 1 : index
    %c225 = arith.constant 225 : index
    %35 = vector.load %arg5[%c1_52, %c225] : memref<18x256xf32, #tpu.memory_space<vmem>>, vector<16x16xf32>
    tpu.vector_store %arg5[%c1_52, %c225], %34 {strides = array<i32>} : memref<18x256xf32, #tpu.memory_space<vmem>>, vector<16x16xf32>,
    %c0_53 = arith.constant 0 : index
    %c0_54 = arith.constant 0 : index
    %36 = vector.load %arg5[%c0_53, %c0_54] : memref<18x256xf32, #tpu.memory_space<vmem>>, vector<18x256xf32>
    %37 = vector.extract_strided_slice %36 {offsets = [0, 0], sizes = [16, 256], strides = [1, 1]} : vector<18x256xf32> to vector<16x256xf32>
    %38 = vector.extract_strided_slice %36 {offsets = [1, 0], sizes = [16, 256], strides = [1, 1]} : vector<18x256xf32> to vector<16x256xf32>
    %39 = vector.extract_strided_slice %36 {offsets = [2, 0], sizes = [16, 256], strides = [1, 1]} : vector<18x256xf32> to vector<16x256xf32>
    %cst_55 = arith.constant 0.000000e+00 : f32
    %40 = vector.broadcast %cst_55 : f32 to vector<16x254xf32>
    %41 = vector.broadcast %1 : vector<1x256xf32> to vector<16x256xf32>
    %42 = arith.mulf %37, %41 : vector<16x256xf32>
    %43 = vector.broadcast %4 : vector<1x256xf32> to vector<16x256xf32>
    %44 = arith.mulf %38, %43 : vector<16x256xf32>
    %45 = arith.addf %42, %44 : vector<16x256xf32>
    %46 = vector.broadcast %7 : vector<1x256xf32> to vector<16x256xf32>
    %47 = arith.mulf %39, %46 : vector<16x256xf32>
    %48 = arith.addf %45, %47 : vector<16x256xf32>
    %49 = vector.extract_strided_slice %48 {offsets = [0, 0], sizes = [16, 254], strides = [1, 1]} : vector<16x256xf32> to vector<16x254xf32>
    %50 = arith.addf %40, %49 : vector<16x254xf32>
    %51 = vector.broadcast %2 : vector<1x256xf32> to vector<16x256xf32>
    %52 = arith.mulf %37, %51 : vector<16x256xf32>
    %53 = vector.broadcast %5 : vector<1x256xf32> to vector<16x256xf32>
    %54 = arith.mulf %38, %53 : vector<16x256xf32>
    %55 = arith.addf %52, %54 : vector<16x256xf32>
    %56 = vector.broadcast %8 : vector<1x256xf32> to vector<16x256xf32>
    %57 = arith.mulf %39, %56 : vector<16x256xf32>
    %58 = arith.addf %55, %57 : vector<16x256xf32>
    %59 = vector.extract_strided_slice %58 {offsets = [0, 1], sizes = [16, 254], strides = [1, 1]} : vector<16x256xf32> to vector<16x254xf32>
    %60 = arith.addf %50, %59 : vector<16x254xf32>
    %61 = vector.broadcast %3 : vector<1x256xf32> to vector<16x256xf32>
    %62 = arith.mulf %37, %61 : vector<16x256xf32>
    %63 = vector.broadcast %6 : vector<1x256xf32> to vector<16x256xf32>
    %64 = arith.mulf %38, %63 : vector<16x256xf32>
    %65 = arith.addf %62, %64 : vector<16x256xf32>
    %66 = vector.broadcast %9 : vector<1x256xf32> to vector<16x256xf32>
    %67 = arith.mulf %39, %66 : vector<16x256xf32>
    %68 = arith.addf %65, %67 : vector<16x256xf32>
    %69 = vector.extract_strided_slice %68 {offsets = [0, 2], sizes = [16, 254], strides = [1, 1]} : vector<16x256xf32> to vector<16x254xf32>
    %70 = arith.addf %60, %69 : vector<16x254xf32>
    %71 = vector.extract_strided_slice %70 {offsets = [0, 0], sizes = [16, 16], strides = [1, 1]} : vector<16x254xf32> to vector<16x16xf32>
    %72 = vector.extract_strided_slice %70 {offsets = [0, 32], sizes = [16, 16], strides = [1, 1]} : vector<16x254xf32> to vector<16x16xf32>
    %73 = arith.addf %71, %72 : vector<16x16xf32>
    %74 = vector.extract_strided_slice %70 {offsets = [0, 64], sizes = [16, 16], strides = [1, 1]} : vector<16x254xf32> to vector<16x16xf32>
    %75 = arith.addf %73, %74 : vector<16x16xf32>
    %76 = vector.extract_strided_slice %70 {offsets = [0, 96], sizes = [16, 16], strides = [1, 1]} : vector<16x254xf32> to vector<16x16xf32>
    %77 = arith.addf %75, %76 : vector<16x16xf32>
    %78 = vector.broadcast %0 : f32 to vector<16x16xf32>
    %79 = arith.addf %77, %78 : vector<16x16xf32>
    %c0_56 = arith.constant 0 : index
    %c0_57 = arith.constant 0 : index
    %c0_58 = arith.constant 0 : index
    %c0_59 = arith.constant 0 : index
    %80 = vector.load %arg4[%c0_56, %c0_57, %c0_58, %c0_59] : memref<2x1x16x16xf32, #tpu.memory_space<vmem>>, vector<1x1x16x16xf32>
    %81 = vector.shape_cast %80 : vector<1x1x16x16xf32> to vector<16x16xf32>
    %82 = vector.shape_cast %79 : vector<16x16xf32> to vector<1x1x16x16xf32>
    tpu.vector_store %arg4[%c0_56, %c0_57, %c0_58, %c0_59], %82 {strides = array<i32>} : memref<2x1x16x16xf32, #tpu.memory_space<vmem>>, vector<1x1x16x16xf32>,
    %83 = vector.extract_strided_slice %70 {offsets = [0, 128], sizes = [16, 16], strides = [1, 1]} : vector<16x254xf32> to vector<16x16xf32>
    %84 = vector.extract_strided_slice %70 {offsets = [0, 160], sizes = [16, 16], strides = [1, 1]} : vector<16x254xf32> to vector<16x16xf32>
    %85 = arith.addf %83, %84 : vector<16x16xf32>
    %86 = vector.extract_strided_slice %70 {offsets = [0, 192], sizes = [16, 16], strides = [1, 1]} : vector<16x254xf32> to vector<16x16xf32>
    %87 = arith.addf %85, %86 : vector<16x16xf32>
    %88 = vector.extract_strided_slice %70 {offsets = [0, 224], sizes = [16, 16], strides = [1, 1]} : vector<16x254xf32> to vector<16x16xf32>
    %89 = arith.addf %87, %88 : vector<16x16xf32>
    %90 = vector.broadcast %0 : f32 to vector<16x16xf32>
    %91 = arith.addf %89, %90 : vector<16x16xf32>
    %c1_60 = arith.constant 1 : index
    %c0_61 = arith.constant 0 : index
    %c0_62 = arith.constant 0 : index
    %c0_63 = arith.constant 0 : index
    %92 = vector.load %arg4[%c1_60, %c0_61, %c0_62, %c0_63] : memref<2x1x16x16xf32, #tpu.memory_space<vmem>>, vector<1x1x16x16xf32>
    %93 = vector.shape_cast %92 : vector<1x1x16x16xf32> to vector<16x16xf32>
    %94 = vector.shape_cast %91 : vector<16x16xf32> to vector<1x1x16x16xf32>
    tpu.vector_store %arg4[%c1_60, %c0_61, %c0_62, %c0_63], %94 {strides = array<i32>} : memref<2x1x16x16xf32, #tpu.memory_space<vmem>>, vector<1x1x16x16xf32>,
    return
  }
  func.func @transform_0(%arg0: i32) -> (i32, i32, i32, i32) {
    %c0_i32 = arith.constant 0 : i32
    %c0_i32_0 = arith.constant 0 : i32
    %c0_i32_1 = arith.constant 0 : i32
    %c0_i32_2 = arith.constant 0 : i32
    return %arg0, %c0_i32, %c0_i32_0, %c0_i32_1 : i32, i32, i32, i32
  }
  func.func @transform_1(%arg0: i32) -> (i32, i32) {
    %c0_i32 = arith.constant 0 : i32
    %c0_i32_0 = arith.constant 0 : i32
    %c0_i32_1 = arith.constant 0 : i32
    return %c0_i32, %c0_i32_0 : i32, i32
  }
  func.func @transform_2(%arg0: i32) -> i32 {
    %c0_i32 = arith.constant 0 : i32
    %c0_i32_0 = arith.constant 0 : i32
    return %c0_i32 : i32
  }
  func.func @transform_3(%arg0: i32) -> (i32, i32, i32, i32) {
    %c0_i32 = arith.constant 0 : i32
    %c0_i32_0 = arith.constant 0 : i32
    %c0_i32_1 = arith.constant 0 : i32
    %c0_i32_2 = arith.constant 0 : i32
    return %arg0, %c0_i32, %c0_i32_0, %c0_i32_1 : i32, i32, i32, i32
  }
}

</mosaic_0001>

<bundles_post_ra>
// kernel: tpu_custom_call.1
= control target key start
LH: loop header
LB: loop body
LE: loop exit
PB: predicated region body
PF: predicated region fallthrough
CT: control target
= control target key end

     0   :  { %9 = vsyncpa [#allocation5], 0  ;;  %s1026_s0 = inlined_call_operand.hbm [shape: f32[2,4,16,16], index: 0, kind: input, shape index: {}]   ;;  %s1027_s1 = inlined_call_operand.hbm [shape: f32[9,256], index: 1, kind: input, shape index: {}]   ;;  %s1028_s2 = inlined_call_operand.<no memory space> [shape: f32[1], index: 2, kind: input, shape index: {}]   ;;  %s1029_s3 = inlined_call_operand.hbm [shape: f32[2,1,16,16], index: 3, kind: output, shape index: {}]  }
   0x1   :  { %10 = vsyncpa [#allocation8], 0 }
   0x2   :  { %11 = vsyncpa [#allocation6], 0  ;;  %s759_s12 = smov [#allocation4]   ;;  %s687_s16 = scalar_lea.hbm %s1026_s0, 2048 }
   0x3   :  { %s17_s13 = sshll.u32 %s759_s12, 4  ;;  %p688_p0 = scmp.ne.s32.totalorder %s1026_s0, %s687_s16  ;;  %s18_s13 = int_to_ptr.vmem [resolvable:$true] %s17_s13 }
   0x4   :  { %p691_p1 = scmp.lt.u32.totalorder %s687_s16, %s1026_s0 }
   0x6   :  { %p693_p2 = pnand %p691_p1, %p688_p0 }
   0x8   :  { %696 = shalt.err (!%p693_p2)
}
   0x9   :  { %s697_s21 = scalar_lea.vmem %s18_s13, 2048  ;;  %p702_p4 = scmp.lt.s32.totalorder %s18_s13, %s18_s13 }
   0xa   :  { %p698_p3 = scmp.ne.s32.totalorder %s18_s13, %s697_s21  ;;  %p703_p5 = scmp.lt.s32.totalorder %s697_s21, %s697_s21 }
   0xc   :  { %p704_p6 = por %p703_p5, %p702_p4 }
   0xe   :  { %p705_p7 = pnand %p704_p6, %p698_p3 }
  0x10   :  { %708 = shalt.err (!%p705_p7)
}
  0x11   :  { %s760_s22 = smov 128   ;;  %s761_s23 = smov 8  }
  0x12   :  { %23 = dma.hbm_to_vmem [thread:$0]  %s1026_s0, 2048, %s18_s13, [#allocation5], %s760_s22, %s760_s22, %s761_s23  }
  0x13   :  { %s762_s26 = smov [#allocation7]   ;;  %s709_s30 = scalar_lea.hbm %s1027_s1, 512 }
  0x14   :  { %s29_s27 = sshll.u32 %s762_s26, 4  ;;  %p710_p8 = scmp.ne.s32.totalorder %s1027_s1, %s709_s30  ;;  %s30_s27 = int_to_ptr.vmem [resolvable:$true] %s29_s27 }
  0x15   :  { %p713_p9 = scmp.lt.u32.totalorder %s709_s30, %s1027_s1 }
  0x17   :  { %p715_p10 = pnand %p713_p9, %p710_p8 }
  0x19   :  { %718 = shalt.err (!%p715_p10)
}
  0x1a   :  { %s719_s8 = scalar_lea.vmem %s30_s27, 512  ;;  %p724_p12 = scmp.lt.s32.totalorder %s30_s27, %s30_s27 }
  0x1b   :  { %p720_p11 = scmp.ne.s32.totalorder %s30_s27, %s719_s8  ;;  %p725_p13 = scmp.lt.s32.totalorder %s719_s8, %s719_s8 }
  0x1d   :  { %p726_p0 = por %p725_p13, %p724_p12 }
  0x1f   :  { %p727_p1 = pnand %p726_p0, %p720_p11 }
  0x21   :  { %730 = shalt.err (!%p727_p1)
}
  0x22   :  { %s763_s0 = smov 256   ;;  %s764_s9 = smov 16  }
  0x23   :  { %35 = dma.hbm_to_vmem [thread:$0]  %s1027_s1, 512, %s30_s27, [#allocation8], %s763_s0, %s763_s0, %s764_s9  }
  0x24   :  { %753 = dma.done.wait [#allocation5], 2048  }
  0x25   :  { %754 = vsyncadd [#allocation5], 4294965248 }
  0x26   :  { %755 = dma.done.wait [#allocation8], 512  }
  0x27   :  { %756 = vsyncadd [#allocation8], 4294966784  ;;  %v765_v0 = vmov 0.0   ;;  %v69_v1 = vld [vmem:[#allocation4 + $0x8] sm:$0xff]  ;;  %v68_v2 = vld [vmem:[#allocation4] sm:$0xff]  ;;  %vm72_vm0 = vcmask 1040384   ;;  %v247_v55 = vlaneseq }
  0x28   :  { %66 = vst [vmem:[#allocation2 + $0x20] sm:$0x3] %v765_v0  ;;  %62 = vst [vmem:[#allocation2] sm:$0xff] %v765_v0  ;;  %v161_v3 = vld [vmem:[#allocation4 + $0x40] sm:$0xff]  ;;  %v74_v4 = vrot.slane %v69_v1, 7  ;;  %v73_v5 = vrot.slane %v68_v2, 7 }
  0x29   :  { %63 = vst [vmem:[#allocation2 + $0x8] sm:$0xff] %v765_v0  ;;  %64 = vst [vmem:[#allocation2 + $0x10] sm:$0xff] %v765_v0  ;;  %v162_v6 = vld [vmem:[#allocation4 + $0x48] sm:$0xff]  ;;  %s766_s12 = smov 1   ;;  %v165_v7 = vrot.slane %v161_v3, 7  ;;  %v92_v10 = vld [vmem:[#allocation4 + $0x10] sm:$0xff] }
  0x2a   :  { %65 = vst [vmem:[#allocation2 + $0x18] sm:$0xff] %v765_v0  ;;  %67 = vst [vmem:[#allocation2 + $0x28] sm:$0x3] %v765_v0  ;;  %80 = vrot.lane.b32.xlu1 %v74_v4, %s766_s12  ;;  %76 = vrot.lane.b32.xlu0 %v73_v5, %s766_s12  ;;  %v75_v8 = vsel %vm72_vm0, %v73_v5, %v74_v4  ;;  %v166_v9 = vrot.slane %v162_v6, 7  ;;  %v93_v11 = vld [vmem:[#allocation4 + $0x18] sm:$0xff]  ;;  %v96_v13 = vrot.slane %v92_v10, 7 }
  0x2b   :  { %v97_v14 = vrot.slane %v93_v11, 7  ;;  %v181_v16 = vld [vmem:[#allocation4 + $0x50] sm:$0xff]  ;;  %v182_v17 = vld [vmem:[#allocation4 + $0x58] sm:$0xff]  ;;  %s767_s1 = smov 33   ;;  %v115_v20 = vld [vmem:[#allocation4 + $0x20] sm:$0xff]  ;;  %s768_s13 = smov 65  }
  0x2c   :  { %v167_v12 = vsel %vm72_vm0, %v165_v7, %v166_v9  ;;  %v185_v18 = vrot.slane %v181_v16, 7  ;;  %v186_v19 = vrot.slane %v182_v17, 7  ;;  %v116_v21 = vld [vmem:[#allocation4 + $0x28] sm:$0xff]  ;;  %v119_v23 = vrot.slane %v115_v20, 7  ;;  %v201_v26 = vld [vmem:[#allocation4 + $0x60] sm:$0xff]  ;;  %v138_v30 = vld [vmem:[#allocation4 + $0x30] sm:$0xff] }
  0x2d   :  { %v98_v15 = vsel %vm72_vm0, %v96_v13, %v97_v14  ;;  %v120_v24 = vrot.slane %v116_v21, 7  ;;  %v202_v27 = vld [vmem:[#allocation4 + $0x68] sm:$0xff]  ;;  %v205_v28 = vrot.slane %v201_v26, 7  ;;  %v139_v31 = vld [vmem:[#allocation4 + $0x38] sm:$0xff]  ;;  %v142_v33 = vrot.slane %v138_v30, 7  ;;  %v221_v36 = vld [vmem:[#allocation4 + $0x70] sm:$0xff] }
  0x2e   :  { %168 = vrot.lane.b32.xlu1 %v165_v7, %s766_s12  ;;  %78 = vrot.lane.b32.xlu0 %v75_v8, %s766_s12  ;;  %v187_v22 = vsel %vm72_vm0, %v185_v18, %v186_v19  ;;  %v206_v29 = vrot.slane %v202_v27, 7  ;;  %v143_v34 = vrot.slane %v139_v31, 7  ;;  %v222_v37 = vld [vmem:[#allocation4 + $0x78] sm:$0xff]  ;;  %s769_s14 = smov 97   ;;  %v225_v38 = vrot.slane %v221_v36, 7  ;;  %s770_s15 = smov 127  }
  0x2f   :  { %v121_v25 = vsel %vm72_vm0, %v119_v23, %v120_v24  ;;  %v226_v39 = vrot.slane %v222_v37, 7  ;;  %vm89_vm1 = vcmask 131080   ;;  %vm85_vm2 = vcmask 138249   ;;  %v47_v61 = vld [vmem:[#allocation7 + $0x1] ss:$8 sm:$0x3] }
  0x30   :  { %v207_v32 = vsel %vm72_vm0, %v205_v28, %v206_v29  ;;  %v144_v35 = vsel %vm72_vm0, %v142_v33, %v143_v34  ;;  %vm87_vm3 = vcmask 138248   ;;  %vm110_vm4 = vcmask 400648   ;;  %v53_v1 = vld [vmem:[#allocation7 + $0x4] ss:$8 sm:$0x3]  ;;  %s771_s16 = smov 126  }
  0x31   :  { %v227_v40 = vsel %vm72_vm0, %v225_v38, %v226_v39  ;;  %vm108_vm5 = vcmask 400649   ;;  %vm112_vm6 = vcmask 393480   ;;  %vm133_vm7 = vcmask 663048   ;;  %v59_v2 = vld [vmem:[#allocation7 + $0x7] ss:$8 sm:$0x3] }
  0x32   :  { %172 = vrot.lane.b32.xlu1 %v166_v9, %s766_s12  ;;  %170 = vrot.lane.b32.xlu0 %v167_v12, %s766_s12  ;;  %vm131_vm8 = vcmask 663049   ;;  %vm135_vm9 = vcmask 655880   ;;  %v248_v58 = vshrl.u32 %v247_v55, 7  ;;  %vm156_vm10 = vcmask 925448   ;;  %s772_s17 = smov 96   ;;  %s773_s18 = smov 64  }
  0x33   :  { %vm154_vm11 = vcmask 925449   ;;  %v49_v3 = vld [vmem:[#allocation7 + $0x2] ss:$8 sm:$0x3]  ;;  %vm158_vm12 = vcmask 918280   ;;  %vm284_vm13 = vcmask 1046528  }
  0x34   :  { %v249_v62 = vsub.s32 0, %v248_v58  ;;  %v55_v4 = vld [vmem:[#allocation7 + $0x5] ss:$8 sm:$0x3]  ;;  %v253_v5 = vsub.s32 1, %v248_v58  ;;  %vm326_vm14 = vcmask 1045504  }
  0x35   :  { %v61_v6 = vld [vmem:[#allocation7 + $0x10] ss:$8 sm:$0x3]  ;;  %v51_v7 = vld [vmem:[#allocation7 + $0x3] ss:$8 sm:$0x3] }
  0x36   :  { %101 = vrot.lane.b32.xlu1 %v98_v15, %s767_s1  ;;  %99 = vrot.lane.b32.xlu0 %v96_v13, %s767_s1  ;;  %v353_v10 = vrot.slane %v47_v61, %v249_v62  ;;  %v368_v11 = vrot.slane %v53_v1, %v249_v62  ;;  %v409_v12 = vrot.slane %v59_v2, %v249_v62  ;;  %v57_v16 = vld [vmem:[#allocation7 + $0x6] ss:$8 sm:$0x3]  ;;  %v45_v17 = vld [vmem:[#allocation7] ss:$8 sm:$0x3] }
  0x37   :  { %v837_v13 = vrot.slane %v49_v3, %v249_v62  ;;  %v841_v15 = vrot.slane %v61_v6, %v249_v62  ;;  %v847_v20 = vrot.slane %v59_v2, %v253_v5  ;;  %v849_v21 = vrot.slane %v51_v7, %v249_v62  ;;  %s774_s19 = smov 32  }
  0x38   :  { %v863_v30 = vrot.slane %v57_v16, %v249_v62  ;;  %v865_v31 = vrot.slane %v57_v16, %v253_v5  ;;  %vm458_vm15 = vcmask 1039360   ;;  %vm578_vm0 = vcmask 1031168  }
  0x3a   :  { %188 = vrot.lane.b32.xlu1 %v185_v18, %s767_s1  ;;  %103 = vrot.lane.b32.xlu0 %v97_v14, %s767_s1  ;;  %v839_v14 = vrot.slane %v55_v4, %v249_v62  ;;  %v843_v18 = vrot.slane %v47_v61, %v253_v5 }
  0x3e   :  { %192 = vrot.lane.b32.xlu1 %v186_v19, %s767_s1  ;;  %190 = vrot.lane.b32.xlu0 %v187_v22, %s767_s1  ;;  %v845_v19 = vrot.slane %v53_v1, %v253_v5  ;;  %v851_v22 = vrot.slane %v49_v3, %v253_v5 }
  0x42   :  { %124 = vrot.lane.b32.xlu1 %v121_v25, %s768_s13  ;;  %122 = vrot.lane.b32.xlu0 %v119_v23, %s768_s13  ;;  %v853_v23 = vrot.slane %v55_v4, %v253_v5  ;;  %v857_v25 = vrot.slane %v51_v7, %v253_v5 }
  0x46   :  { %208 = vrot.lane.b32.xlu1 %v205_v28, %s768_s13  ;;  %126 = vrot.lane.b32.xlu0 %v120_v24, %s768_s13  ;;  %v855_v24 = vrot.slane %v61_v6, %v253_v5 }
  0x4a   :  { %212 = vrot.lane.b32.xlu1 %v206_v29, %s768_s13  ;;  %210 = vrot.lane.b32.xlu0 %v207_v32, %s768_s13  ;;  %v867_v32 = vrot.slane %v45_v17, %v249_v62 }
  0x4e   :  { %147 = vrot.lane.b32.xlu1 %v144_v35, %s769_s14  ;;  %145 = vrot.lane.b32.xlu0 %v142_v33, %s769_s14  ;;  %v869_v33 = vrot.slane %v45_v17, %v253_v5 }
  0x52   :  { %228 = vrot.lane.b32.xlu1 %v225_v38, %s769_s14  ;;  %149 = vrot.lane.b32.xlu0 %v143_v34, %s769_s14 }
  0x56   :  { %232 = vrot.lane.b32.xlu1 %v226_v39, %s769_s14  ;;  %230 = vrot.lane.b32.xlu0 %v227_v40, %s769_s14 }
  0x9c   :  { %v81_v41 = vpop.permute.xlu1 %80  ;;  %v77_v42 = vpop.permute.xlu0 %76 }
  0x9d   :  { %90 = vst.msk [vmem:[#allocation2 + $0x20] sm:$0x1] %vm89_vm1, %v81_v41 }
  0x9e   :  { %86 = vst.msk [vmem:[#allocation2] sm:$0xfe] %vm85_vm2, %v77_v42 }
  0xa0   :  { %v169_v43 = vpop.permute.xlu1 %168  ;;  %v79_v44 = vpop.permute.xlu0 %78 }
  0xa1   :  { %177 = vst.msk [vmem:[#allocation2 + $0x8] sm:$0xfe] %vm85_vm2, %v169_v43 }
  0xa2   :  { %88 = vst.msk [vmem:[#allocation2 + $0x10] sm:$0xff] %vm87_vm3, %v79_v44 }
  0xa4   :  { %v173_v45 = vpop.permute.xlu1 %172  ;;  %v171_v46 = vpop.permute.xlu0 %170 }
  0xa5   :  { %179 = vst.msk [vmem:[#allocation2 + $0x28] sm:$0x1] %vm89_vm1, %v173_v45  ;;  %vm618_vm1 = vcmask 130048  }
  0xa6   :  { %178 = vst.msk [vmem:[#allocation2 + $0x18] sm:$0xff] %vm87_vm3, %v171_v46 }
  0xa8   :  { %v102_v47 = vpop.permute.xlu1 %101  ;;  %v100_v48 = vpop.permute.xlu0 %99 }
  0xa9   :  { %111 = vst.msk [vmem:[#allocation2 + $0x10] sm:$0xff] %vm110_vm4, %v102_v47 }
  0xaa   :  { %109 = vst.msk [vmem:[#allocation2] sm:$0xfe] %vm108_vm5, %v100_v48 }
  0xac   :  { %v189_v49 = vpop.permute.xlu1 %188  ;;  %v104_v50 = vpop.permute.xlu0 %103 }
  0xad   :  { %197 = vst.msk [vmem:[#allocation2 + $0x8] sm:$0xfe] %vm108_vm5, %v189_v49 }
  0xae   :  { %113 = vst.msk [vmem:[#allocation2 + $0x20] sm:$0x1] %vm112_vm6, %v104_v50 }
  0xb0   :  { %v193_v51 = vpop.permute.xlu1 %192  ;;  %v191_v52 = vpop.permute.xlu0 %190 }
  0xb1   :  { %199 = vst.msk [vmem:[#allocation2 + $0x28] sm:$0x1] %vm112_vm6, %v193_v51 }
  0xb2   :  { %198 = vst.msk [vmem:[#allocation2 + $0x18] sm:$0xff] %vm110_vm4, %v191_v52 }
  0xb4   :  { %v125_v53 = vpop.permute.xlu1 %124  ;;  %v123_v54 = vpop.permute.xlu0 %122 }
  0xb5   :  { %134 = vst.msk [vmem:[#allocation2 + $0x10] sm:$0xff] %vm133_vm7, %v125_v53 }
  0xb6   :  { %132 = vst.msk [vmem:[#allocation2] sm:$0xfe] %vm131_vm8, %v123_v54 }
  0xb8   :  { %v209_v56 = vpop.permute.xlu1 %208  ;;  %v127_v57 = vpop.permute.xlu0 %126 }
  0xb9   :  { %217 = vst.msk [vmem:[#allocation2 + $0x8] sm:$0xfe] %vm131_vm8, %v209_v56 }
  0xba   :  { %136 = vst.msk [vmem:[#allocation2 + $0x20] sm:$0x1] %vm135_vm9, %v127_v57 }
  0xbc   :  { %v213_v59 = vpop.permute.xlu1 %212  ;;  %v211_v60 = vpop.permute.xlu0 %210 }
  0xbd   :  { %219 = vst.msk [vmem:[#allocation2 + $0x28] sm:$0x1] %vm135_vm9, %v213_v59 }
  0xbe   :  { %218 = vst.msk [vmem:[#allocation2 + $0x18] sm:$0xff] %vm133_vm7, %v211_v60 }
  0xc0   :  { %v148_v63 = vpop.permute.xlu1 %147  ;;  %v146_v0 = vpop.permute.xlu0 %145 }
  0xc1   :  { %157 = vst.msk [vmem:[#allocation2 + $0x10] sm:$0xff] %vm156_vm10, %v148_v63 }
  0xc2   :  { %155 = vst.msk [vmem:[#allocation2] sm:$0xfe] %vm154_vm11, %v146_v0 }
  0xc4   :  { %v229_v8 = vpop.permute.xlu1 %228  ;;  %v150_v9 = vpop.permute.xlu0 %149 }
  0xc5   :  { %237 = vst.msk [vmem:[#allocation2 + $0x8] sm:$0xfe] %vm154_vm11, %v229_v8 }
  0xc6   :  { %159 = vst.msk [vmem:[#allocation2 + $0x20] sm:$0x1] %vm158_vm12, %v150_v9 }
  0xc8   :  { %v233_v26 = vpop.permute.xlu1 %232  ;;  %v231_v27 = vpop.permute.xlu0 %230  ;;  %v861_v29 = vld [vmem:[#allocation2 + $0x10] sm:$0xff] }
  0xc9   :  { %v859_v28 = vld [vmem:[#allocation2] sm:$0xff]  ;;  %239 = vst.msk [vmem:[#allocation2 + $0x28] sm:$0x1] %vm158_vm12, %v233_v26  ;;  %v377_v36 = vmul.f32 %v368_v11, %v861_v29  ;;  %v418_v38 = vmul.f32 %v409_v12, %v861_v29  ;;  %v362_v39 = vmul.f32 %v353_v10, %v861_v29  ;;  %v497_v45 = vmul.f32 %v839_v14, %v861_v29 }
  0xca   :  { %238 = vst.msk [vmem:[#allocation2 + $0x18] sm:$0xff] %vm156_vm10, %v231_v27  ;;  %v360_v34 = vmul.f32 %v353_v10, %v859_v28  ;;  %v375_v35 = vmul.f32 %v368_v11, %v859_v28  ;;  %v416_v37 = vmul.f32 %v409_v12, %v859_v28  ;;  %v480_v40 = vmul.f32 %v837_v13, %v859_v28 }
  0xcb   :  { %v495_v41 = vmul.f32 %v839_v14, %v859_v28  ;;  %v388_v43 = vrot.slane %v377_v36, 1  ;;  %v429_v46 = vrot.slane %v418_v38, 2  ;;  %v536_v50 = vmul.f32 %v841_v15, %v859_v28 }
  0xcc   :  { %v387_v42 = vrot.slane %v375_v35, 1  ;;  %v428_v44 = vrot.slane %v416_v37, 2  ;;  %v887_v48 = vld [vmem:[#allocation2 + $0x8] sm:$0xff]  ;;  %v893_v51 = vmul.f32 %v841_v15, %v861_v29  ;;  %v508_v62 = vrot.slane %v497_v45, 1 }
  0xcd   :  { %v885_v47 = vld [vmem:[#allocation2 + $0x20] sm:$0x3]  ;;  %v507_v49 = vrot.slane %v495_v41, 1  ;;  %v361_v55 = vmul.f32 %v843_v18, %v887_v48  ;;  %v376_v58 = vmul.f32 %v845_v19, %v887_v48  ;;  %v417_v59 = vmul.f32 %v847_v20, %v887_v48 }
  0xce   :  { %v389_v52 = vsel %vm284_vm13, %v387_v42, %v388_v43  ;;  %v379_v53 = vmul.f32 %v368_v11, %v885_v47  ;;  %v420_v54 = vmul.f32 %v409_v12, %v885_v47  ;;  %v430_v57 = vsel %vm326_vm14, %v428_v44, %v429_v46 }
  0xcf   :  { %v401_v56 = vadd.f32 %v389_v52, %v360_v34  ;;  %v548_v63 = vrot.slane %v536_v50, 2  ;;  %v390_v2 = vrot.slane %v376_v58, 1  ;;  %v431_v3 = vrot.slane %v417_v59, 2 }
  0xd0   :  { %v393_v60 = vrot.slane %v379_v53, 1  ;;  %v434_v61 = vrot.slane %v420_v54, 2  ;;  %v549_v4 = vrot.slane %v893_v51, 2  ;;  %v908_v5 = vld [vmem:[#allocation2 + $0x28] sm:$0x3]  ;;  %v509_v11 = vsel %vm284_vm13, %v507_v49, %v508_v62 }
  0xd1   :  { %v442_v0 = vadd.f32 %v430_v57, %v401_v56  ;;  %v905_v1 = vld [vmem:[#allocation2 + $0x18] sm:$0xff]  ;;  %v521_v27 = vadd.f32 %v509_v11, %v480_v40  ;;  %v380_v34 = vmul.f32 %v845_v19, %v908_v5  ;;  %v421_v36 = vmul.f32 %v847_v20, %v908_v5 }
  0xd2   :  { %v394_v6 = vsel %vm284_vm13, %v388_v43, %v393_v60  ;;  %v435_v7 = vsel %vm326_vm14, %v429_v46, %v434_v61  ;;  %v378_v8 = vmul.f32 %v845_v19, %v905_v1  ;;  %v419_v9 = vmul.f32 %v847_v20, %v905_v1 }
  0xd3   :  { %450 = vrot.lane.b32.xlu0 %v442_v0, %s770_s15  ;;  %v403_v10 = vadd.f32 %v394_v6, %v362_v39  ;;  %v550_v12 = vsel %vm326_vm14, %v548_v63, %v549_v4  ;;  %v363_v16 = vmul.f32 %v843_v18, %v905_v1  ;;  %v482_v37 = vmul.f32 %v837_v13, %v861_v29 }
  0xd4   :  { %v391_v17 = vrot.slane %v378_v8, 1  ;;  %v432_v26 = vrot.slane %v419_v9, 2  ;;  %v499_v38 = vmul.f32 %v839_v14, %v885_v47  ;;  %v562_v41 = vadd.f32 %v550_v12, %v521_v27 }
  0xd5   :  { %v444_v35 = vadd.f32 %v435_v7, %v403_v10  ;;  %v395_v42 = vrot.slane %v380_v34, 1  ;;  %v436_v19 = vrot.slane %v421_v36, 2  ;;  %v540_v20 = vmul.f32 %v841_v15, %v885_v47 }
  0xd6   :  { %v392_v39 = vsel %vm284_vm13, %v390_v2, %v391_v17  ;;  %v433_v18 = vsel %vm326_vm14, %v431_v3, %v432_v26  ;;  %v513_v43 = vrot.slane %v499_v38, 1  ;;  %v481_v13 = vmul.f32 %v851_v22, %v887_v48 }
  0xd7   :  { %454 = vrot.lane.b32.xlu0 %v444_v35, %s770_s15  ;;  %v402_v40 = vadd.f32 %v392_v39, %v361_v55  ;;  %v396_v44 = vsel %vm284_vm13, %v391_v17, %v395_v42  ;;  %v496_v14 = vmul.f32 %v853_v23, %v887_v48  ;;  %v498_v45 = vmul.f32 %v853_v23, %v905_v1 }
  0xd8   :  { %v404_v49 = vadd.f32 %v396_v44, %v363_v16  ;;  %v437_v50 = vsel %vm326_vm14, %v432_v26, %v436_v19  ;;  %v514_v51 = vsel %vm284_vm13, %v508_v62, %v513_v43  ;;  %v554_v53 = vrot.slane %v540_v20, 2 }
  0xd9   :  { %v443_v46 = vadd.f32 %v433_v18, %v402_v40  ;;  %v523_v52 = vadd.f32 %v514_v51, %v482_v37  ;;  %v510_v15 = vrot.slane %v496_v14, 1  ;;  %v511_v54 = vrot.slane %v498_v45, 1 }
  0xda   :  { %v445_v55 = vadd.f32 %v437_v50, %v404_v49  ;;  %v537_v56 = vmul.f32 %v855_v24, %v887_v48  ;;  %v539_v57 = vmul.f32 %v855_v24, %v905_v1  ;;  %v555_v58 = vsel %vm326_vm14, %v549_v4, %v554_v53 }
  0xdb   :  { %452 = vrot.lane.b32.xlu1 %v443_v46, %s770_s15  ;;  %570 = vrot.lane.b32.xlu0 %v562_v41, %s771_s16  ;;  %v512_v59 = vsel %vm284_vm13, %v510_v15, %v511_v54  ;;  %v483_v60 = vmul.f32 %v851_v22, %v905_v1  ;;  %v500_v61 = vmul.f32 %v853_v23, %v908_v5 }
  0xdc   :  { %v564_v62 = vadd.f32 %v555_v58, %v523_v52  ;;  %v522_v63 = vadd.f32 %v512_v59, %v481_v13  ;;  %v551_v0 = vrot.slane %v537_v56, 2  ;;  %v552_v2 = vrot.slane %v539_v57, 2 }
  0xdd   :  { %v515_v3 = vrot.slane %v500_v61, 1  ;;  %v541_v6 = vmul.f32 %v855_v24, %v908_v5  ;;  %v272_v7 = vmul.f32 %v849_v21, %v859_v28  ;;  %v273_v4 = vmul.f32 %v857_v25, %v887_v48 }
  0xde   :  { %v553_v22 = vsel %vm326_vm14, %v551_v0, %v552_v2  ;;  %v274_v23 = vmul.f32 %v849_v21, %v861_v29  ;;  %v275_v8 = vmul.f32 %v857_v25, %v905_v1  ;;  %v314_v34 = vmul.f32 %v863_v30, %v859_v28 }
  0xdf   :  { %456 = vrot.lane.b32.xlu1 %v445_v55, %s770_s15  ;;  %574 = vrot.lane.b32.xlu0 %v564_v62, %s771_s16  ;;  %v563_v9 = vadd.f32 %v553_v22, %v522_v63  ;;  %v516_v24 = vsel %vm284_vm13, %v511_v54, %v515_v3  ;;  %v556_v10 = vrot.slane %v541_v6, 2  ;;  %v285_v11 = vrot.slane %v272_v7, 1 }
  0xe0   :  { %v524_v12 = vadd.f32 %v516_v24, %v483_v60  ;;  %v286_v16 = vrot.slane %v274_v23, 1  ;;  %v288_v17 = vrot.slane %v273_v4, 1  ;;  %v289_v26 = vrot.slane %v275_v8, 1 }
  0xe1   :  { %v557_v27 = vsel %vm326_vm14, %v552_v2, %v556_v10  ;;  %v315_v35 = vmul.f32 %v865_v31, %v887_v48  ;;  %v316_v36 = vmul.f32 %v863_v30, %v861_v29  ;;  %v317_v18 = vmul.f32 %v865_v31, %v905_v1 }
  0xe2   :  { %v565_v37 = vadd.f32 %v557_v27, %v524_v12  ;;  %v287_v38 = vsel %vm284_vm13, %v285_v11, %v286_v16  ;;  %v290_v39 = vsel %vm284_vm13, %v288_v17, %v289_v26  ;;  %v327_v41 = vrot.slane %v314_v34, 2 }
  0xe3   :  { %572 = vrot.lane.b32.xlu1 %v563_v9, %s771_s16  ;;  %v328_v42 = vrot.slane %v316_v36, 2  ;;  %v330_v40 = vrot.slane %v315_v35, 2  ;;  %v257_v19 = vmul.f32 %v867_v32, %v859_v28  ;;  %v331_v43 = vrot.slane %v317_v18, 2 }
  0xe4   :  { %v258_v20 = vmul.f32 %v869_v33, %v887_v48  ;;  %v276_v44 = vmul.f32 %v849_v21, %v885_v47  ;;  %v277_v13 = vmul.f32 %v857_v25, %v908_v5  ;;  %v318_v46 = vmul.f32 %v863_v30, %v885_v47 }
  0xe5   :  { %v329_v14 = vsel %vm326_vm14, %v327_v41, %v328_v42  ;;  %v299_v45 = vadd.f32 %v287_v38, %v257_v19  ;;  %v319_v49 = vmul.f32 %v865_v31, %v908_v5  ;;  %v332_v28 = vsel %vm326_vm14, %v330_v40, %v331_v43 }
  0xe6   :  { %v300_v48 = vadd.f32 %v290_v39, %v258_v20  ;;  %v291_v50 = vrot.slane %v276_v44, 1  ;;  %v293_v51 = vrot.slane %v277_v13, 1  ;;  %v333_v52 = vrot.slane %v318_v46, 2 }
  0xe7   :  { %576 = vrot.lane.b32.xlu1 %v565_v37, %s771_s16  ;;  %v341_v21 = vadd.f32 %v329_v14, %v299_v45  ;;  %v335_v53 = vrot.slane %v319_v49, 2  ;;  %v259_v25 = vmul.f32 %v867_v32, %v861_v29  ;;  %v260_v31 = vmul.f32 %v869_v33, %v905_v1 }
  0xe8   :  { %v342_v15 = vadd.f32 %v332_v28, %v300_v48  ;;  %v292_v54 = vsel %vm284_vm13, %v286_v16, %v291_v50  ;;  %v294_v30 = vsel %vm284_vm13, %v289_v26, %v293_v51  ;;  %v334_v47 = vsel %vm326_vm14, %v328_v42, %v333_v52 }
  0xe9   :  { %v336_v5 = vsel %vm326_vm14, %v331_v43, %v335_v53  ;;  %v301_v55 = vadd.f32 %v292_v54, %v259_v25  ;;  %v302_v56 = vadd.f32 %v294_v30, %v260_v31  ;;  %v615_v37 = vstv %s1028_s2  ;;  %s775_s2 = smov [#allocation9]  }
  0xea   :  { %s657_s24 = sshll.u32 %s775_s2, 4  ;;  %s658_s24 = int_to_ptr.vmem [resolvable:$true] %s657_s24 }
  0xeb   :  { %v343_v57 = vadd.f32 %v334_v47, %v301_v55  ;;  %v344_v58 = vadd.f32 %v336_v5, %v302_v56  ;;  %s731_s25 = scalar_lea.vmem %s658_s24, 512  ;;  %p736_p3 = scmp.lt.s32.totalorder %s658_s24, %s658_s24 }
  0xec   :  { %p732_p2 = scmp.ne.s32.totalorder %s658_s24, %s731_s25  ;;  %p737_p4 = scmp.lt.s32.totalorder %s731_s25, %s731_s25 }
  0xee   :  { %p738_p5 = por %p737_p4, %p736_p3 }
  0xf0   :  { %p739_p6 = pnand %p738_p5, %p732_p2 }
 0x145   :  { %v451_v59 = vpop.permute.xlu0 %450 }
 0x149   :  { %v455_v29 = vpop.permute.xlu0 %454 }
 0x14d   :  { %v453_v60 = vpop.permute.xlu1 %452  ;;  %v571_v0 = vpop.permute.xlu0 %570 }
 0x14e   :  { %v466_v32 = vadd.f32 %v453_v60, %v342_v15  ;;  %v459_v33 = vsel %vm458_vm15, %v451_v59, %v453_v60 }
 0x14f   :  { %v465_v7 = vadd.f32 %v459_v33, %v341_v21 }
 0x151   :  { %v457_v61 = vpop.permute.xlu1 %456  ;;  %v575_v22 = vpop.permute.xlu0 %574 }
 0x152   :  { %v468_v2 = vadd.f32 %v457_v61, %v344_v58  ;;  %v460_v4 = vsel %vm458_vm15, %v455_v29, %v457_v61 }
 0x153   :  { %v467_v9 = vadd.f32 %v460_v4, %v343_v57 }
 0x155   :  { %v573_v62 = vpop.permute.xlu1 %572 }
 0x156   :  { %v586_v63 = vadd.f32 %v573_v62, %v466_v32  ;;  %v579_v6 = vsel %vm578_vm0, %v571_v0, %v573_v62 }
 0x157   :  { %v585_v23 = vadd.f32 %v579_v6, %v465_v7 }
 0x158   :  { %623 = vrot.lane.b32.xlu0 %v586_v63, %s772_s17 }
 0x159   :  { %v577_v1 = vpop.permute.xlu1 %576 }
 0x15a   :  { %v588_v3 = vadd.f32 %v577_v1, %v468_v2  ;;  %v580_v8 = vsel %vm578_vm0, %v575_v22, %v577_v1 }
 0x15b   :  { %v587_v24 = vadd.f32 %v580_v8, %v467_v9 }
 0x15c   :  { %625 = vrot.lane.b32.xlu1 %v588_v3, %s772_s17  ;;  %631 = vrot.lane.b32.xlu0 %v586_v63, %s773_s18 }
 0x160   :  { %633 = vrot.lane.b32.xlu1 %v588_v3, %s773_s18  ;;  %591 = vrot.lane.b32.xlu0 %v585_v23, %s772_s17 }
 0x164   :  { %593 = vrot.lane.b32.xlu1 %v587_v24, %s772_s17  ;;  %599 = vrot.lane.b32.xlu0 %v585_v23, %s773_s18 }
 0x168   :  { %601 = vrot.lane.b32.xlu1 %v587_v24, %s773_s18  ;;  %607 = vrot.lane.b32.xlu0 %v585_v23, %s774_s19 }
 0x16c   :  { %609 = vrot.lane.b32.xlu1 %v587_v24, %s774_s19  ;;  %639 = vrot.lane.b32.xlu0 %v586_v63, %s774_s19 }
 0x170   :  { %641 = vrot.lane.b32.xlu1 %v588_v3, %s774_s19 }
 0x1ca   :  { %v624_v10 = vpop.permute.xlu0 %623 }
 0x1cb   :  { %v629_v39 = vadd.f32 %v624_v10, %v586_v63 }
 0x1ce   :  { %v626_v11 = vpop.permute.xlu1 %625  ;;  %v632_v12 = vpop.permute.xlu0 %631 }
 0x1cf   :  { %v637_v42 = vadd.f32 %v632_v12, %v629_v39  ;;  %v630_v44 = vadd.f32 %v626_v11, %v588_v3 }
 0x1d2   :  { %v634_v16 = vpop.permute.xlu1 %633  ;;  %v592_v17 = vpop.permute.xlu0 %591 }
 0x1d3   :  { %v597_v34 = vadd.f32 %v592_v17, %v585_v23  ;;  %v638_v45 = vadd.f32 %v634_v16, %v630_v44 }
 0x1d6   :  { %v594_v26 = vpop.permute.xlu1 %593  ;;  %v600_v27 = vpop.permute.xlu0 %599 }
 0x1d7   :  { %v605_v35 = vadd.f32 %v600_v27, %v597_v34  ;;  %v598_v18 = vadd.f32 %v594_v26, %v587_v24 }
 0x1da   :  { %v602_v36 = vpop.permute.xlu1 %601  ;;  %v608_v38 = vpop.permute.xlu0 %607 }
 0x1db   :  { %v613_v41 = vadd.f32 %v608_v38, %v605_v35  ;;  %v606_v40 = vadd.f32 %v602_v36, %v598_v18 }
 0x1dd   :  { %v616_v19 = vadd.f32 %v615_v37, %v613_v41 }
 0x1de   :  { %v610_v43 = vpop.permute.xlu1 %609  ;;  %v640_v20 = vpop.permute.xlu0 %639 }
 0x1df   :  { %619 = vst.msk [vmem:[#allocation9] sm:$0xff] %vm618_vm1, %v616_v19  ;;  %v614_v13 = vadd.f32 %v610_v43, %v606_v40  ;;  %v645_v14 = vadd.f32 %v640_v20, %v637_v42 }
 0x1e1   :  { %v617_v46 = vadd.f32 %v615_v37, %v614_v13  ;;  %v647_v49 = vadd.f32 %v645_v14, %v615_v37 }
 0x1e2   :  { %v642_v28 = vpop.permute.xlu1 %641 }
 0x1e3   :  { %620 = vst.msk [vmem:[#allocation9 + $0x8] sm:$0xff] %vm618_vm1, %v617_v46  ;;  %650 = vst.msk [vmem:[#allocation9 + $0x10] sm:$0xff] %vm618_vm1, %v647_v49  ;;  %v646_v48 = vadd.f32 %v642_v28, %v638_v45 }
 0x1e5   :  { %v648_v50 = vadd.f32 %v646_v48, %v615_v37 }
 0x1e7   :  { %651 = vst.msk [vmem:[#allocation9 + $0x18] sm:$0xff] %vm618_vm1, %v648_v50 }
 0x1e8   :  { %742 = shalt.err (!%p739_p6)
}
 0x1e9   :  { %s743_s28 = scalar_lea.hbm %s1029_s3, 512 }
 0x1ea   :  { %p744_p7 = scmp.ne.s32.totalorder %s1029_s3, %s743_s28  ;;  %p747_p8 = scmp.lt.u32.totalorder %s743_s28, %s1029_s3 }
 0x1ec   :  { %p749_p9 = pnand %p747_p8, %p744_p7 }
 0x1ee   :  { %752 = shalt.err (!%p749_p9)
}
 0x1ef   :  { %663 = dma.vmem_to_hbm [thread:$0]  %s658_s24, 512, %s1029_s3, [#allocation6], %s760_s22, %s760_s22, %s761_s23  }
 0x1f0   :  { %757 = dma.done.wait [#allocation6], 512  }
 0x1f1   :  { %758 = vsyncadd [#allocation6], 4294966784 }
 0x1f2   :  { %667 = vsyncpa [#allocation5], 1 }
 0x1f3   :  { %668 = vsyncpa [#allocation8], 1 }
 0x1f4   :  { %669 = vsyncpa [#allocation6], 1 }

</bundles_post_ra>
